<compile_context>
chip_gen: v6e
topology: v6e:2x2x1
jax: 0.10.0
libtpu: 0.0.40
codegen_flags: <defaults>
</compile_context>

<pallas_src>
import functools

import jax
import jax.numpy as jnp
from jax import lax
from jax.experimental import pallas as pl
from jax.experimental.pallas import tpu as pltpu


def _round_up(x, m):
    return ((x + m - 1) // m) * m


def _cdiv(a, b):
    return -(-a // b)


def _conv_stats_kernel(xm_ref, xh_ref, w_ref, conv_ref, stats_ref, scr_ref, *,
                       taps, c_in, t_blk, nvp, t_out, merge_taps):
    """Conv tile (one merged or K per-tap MXU matmuls) + per-tile partial BN statistics."""
    m_tile = t_blk * nvp

    if merge_taps:
        # Shallow contraction: gather the K temporal taps into one (K*C_in, m_tile) operand in
        # VMEM scratch and contract with the (C8, K*C_in) weight in a single MXU matmul.
        # All lane offsets are multiples of nvp (>= 128).
        for k, (p, o) in enumerate(taps):
            r0 = k * c_in
            lo = o * nvp
            hi = lo + m_tile
            if hi <= m_tile:                      # tap fully inside the main tile
                scr_ref[r0:r0 + c_in, :] = xm_ref[p, :, lo:hi]
            elif lo >= m_tile:                    # tap fully inside the halo tile
                scr_ref[r0:r0 + c_in, :] = xh_ref[p, :, lo - m_tile:hi - m_tile]
            else:                                 # tap straddles the main/halo boundary
                w_main = m_tile - lo
                scr_ref[r0:r0 + c_in, :w_main] = xm_ref[p, :, lo:m_tile]
                scr_ref[r0:r0 + c_in, w_main:] = xh_ref[p, :, :hi - m_tile]
        conv = jnp.dot(w_ref[...], scr_ref[...], preferred_element_type=jnp.float32)
        conv_ref[...] = conv.astype(conv_ref.dtype)
    else:
        # MXU-deep contraction: skip the gather and accumulate K per-tap matmuls reading the
        # input tiles directly (saves the K*C_in x m_tile copies through the vld/vst slots).
        for k, (p, o) in enumerate(taps):
            wk = w_ref[k]                         # (C8, c_in) weight slab for tap k
            lo = o * nvp
            hi = lo + m_tile
            if hi <= m_tile:
                dd = jnp.dot(wk, xm_ref[p, :, lo:hi], preferred_element_type=jnp.float32)
                if k == 0:
                    scr_ref[...] = dd
                else:
                    scr_ref[...] += dd
            elif lo >= m_tile:
                dd = jnp.dot(wk, xh_ref[p, :, lo - m_tile:hi - m_tile],
                             preferred_element_type=jnp.float32)
                if k == 0:
                    scr_ref[...] = dd
                else:
                    scr_ref[...] += dd
            else:
                w_main = m_tile - lo
                dm = jnp.dot(wk, xm_ref[p, :, lo:m_tile], preferred_element_type=jnp.float32)
                dh = jnp.dot(wk, xh_ref[p, :, :hi - m_tile], preferred_element_type=jnp.float32)
                if k == 0:
                    scr_ref[:, :w_main] = dm
                    scr_ref[:, w_main:] = dh
                else:
                    scr_ref[:, :w_main] += dm
                    scr_ref[:, w_main:] += dh
        conv_ref[...] = scr_ref[...].astype(conv_ref.dtype)

    # Partial BN statistics.  Read the (narrow) stored tile back so the f32 matmul result's
    # live range ends at the store above (less spill pressure at large m_tile).
    c = conv_ref[...].astype(jnp.float32)

    def _write_stats(v):
        stats_ref[:, :, 0:1] = jnp.sum(v, axis=1, keepdims=True)[None]
        stats_ref[:, :, 1:2] = jnp.sum(v * v, axis=1, keepdims=True)[None]

    if t_out % t_blk == 0:
        # No tile extends past T_out: stats never need masking (zero-padded N*V lanes are
        # exactly 0 because there is no conv bias).
        _write_stats(c)
    else:
        i = pl.program_id(0)
        is_tail = (i + 1) * t_blk > t_out

        @pl.when(jnp.logical_not(is_tail))
        def _():
            _write_stats(c)

        @pl.when(is_tail)
        def _():
            # Rows at/after T_out hold real conv values (built from real input rows through the
            # early taps); they must not leak into the batch statistics.
            valid_lanes = jnp.clip(t_out - i * t_blk, 0, t_blk) * nvp
            lane = lax.broadcasted_iota(jnp.int32, c.shape, 1)
            _write_stats(jnp.where(lane < valid_lanes, c, 0.0))


def temporal_conv(x, weight, bias, gamma, beta, *, kernel_size, stride=1, dilation=1,
                  eps=1e-5, block_lanes=16384, compute_dtype=jnp.bfloat16,
                  merge_taps=None, vmem_budget_bytes=40 * 1024 * 1024):
    """x: (N, C_in, T, V) NCHW; weight: (C_out, C_in, K, 1). Returns (N, C_out, T_out, V) f32."""
    del bias  # A per-channel conv bias is cancelled exactly by BatchNorm's mean subtraction.
    N, C_in, T, V = x.shape
    C_out = weight.shape[0]
    K = kernel_size
    s = stride
    d = dilation
    pad = (K + (K - 1) * (d - 1) - 1) // 2
    T_p = T + 2 * pad
    T_out = (T_p - d * (K - 1) - 1) // s + 1
    assert T_out > 0

    NV = N * V
    NVp = _round_up(NV, 128)                 # lane-dense tiles
    c_in_p = C_in + (C_in % 2)               # even channel count -> aligned packed sublanes
    C8 = _round_up(C_out, 8)                 # sublane-aligned output rows (weights zero-padded)
    itemsize = jnp.dtype(compute_dtype).itemsize

    # Phase decomposition of the strided conv: padded input row t*s + k*d lives in phase plane
    # p_k = (k*d) % s at row t + o_k with o_k = (k*d) // s.
    taps = tuple(((k * d) % s, (k * d) // s) for k in range(K))
    o_max = max(o for _, o in taps)
    h_rows = max(o_max, 1)                   # halo rows fetched per tile

    if merge_taps is None:
        # Merge the taps only when the contraction is shallower than the MXU; otherwise the
        # gather copies cost more than the merged matmul saves.
        merge_taps = (K * c_in_p) < 128

    # ---- tile size: start from block_lanes, shrink until the double-buffered footprint fits
    # the VMEM budget (sized for v7x's 64 MiB physical VMEM); vmem_limit follows the footprint.
    def _footprint(tb):
        m = tb * NVp
        f = 2 * s * c_in_p * m * itemsize                # main input tile   (x2 buffers)
        f += 2 * s * c_in_p * h_rows * NVp * itemsize    # halo tile         (x2 buffers)
        f += 2 * C8 * m * itemsize                       # conv output tile  (x2 buffers)
        f += 2 * C8 * 2 * 4                              # stats tile        (x2 buffers)
        f += 2 * C8 * K * c_in_p * itemsize              # weights           (x2 buffers)
        f += K * c_in_p * m * itemsize if merge_taps else C8 * m * 4   # scratch
        return f

    t_blk = max(1, block_lanes // NVp)
    t_blk = min(t_blk, T_out)
    t_blk = _round_up(max(t_blk, h_rows), h_rows)
    while t_blk > h_rows and _footprint(t_blk) > vmem_budget_bytes:
        t_blk -= h_rows
    G = _cdiv(T_out, t_blk)
    # v7x runs the "parallel" grid axis on 2 TensorCores: prefer an even tile count (shrink the
    # tile rather than adding a dead tile).  No effect on v5e/v6e (single TC).
    if G > 1 and G % 2 == 1:
        t_alt = _round_up(_cdiv(T_out, G + 1), h_rows)
        if 0 < t_alt <= t_blk and _cdiv(T_out, t_alt) % 2 == 0:
            t_blk = t_alt
            G = _cdiv(T_out, t_alt)
    T_out_pad = G * t_blk
    M_tile = t_blk * NVp
    U = _round_up(max((G + 1) * t_blk, _cdiv(T_p, s)), t_blk)   # rows per phase plane
    vmem_limit = int(min(_footprint(t_blk) + (16 << 20), 64 << 20))

    # ---- glue (plain JAX): pad + phase-split + lane-flatten. ------------------------------
    # TODO(synk): callers that can supply x pre-flattened as (C_in, T, N*V) (and accept a
    # (C_out, T_out, N*V) result) would skip these wrapper-side HBM round trips entirely.
    xt = jnp.transpose(x, (1, 2, 0, 3)).reshape(C_in, T, NV)
    xt = jnp.pad(xt, ((0, c_in_p - C_in), (pad, U * s - T - pad), (0, NVp - NV)))
    xf = jnp.transpose(xt.reshape(c_in_p, U, s, NVp), (2, 0, 1, 3))
    xf = xf.reshape(s, c_in_p, U * NVp).astype(compute_dtype)

    # Weights: k-major to match the in-kernel tap order; rows zero-padded to C8.
    w3 = jnp.transpose(weight[..., 0], (0, 2, 1))                        # (C_out, K, C_in)
    w3 = jnp.pad(w3, ((0, C8 - C_out), (0, 0), (0, c_in_p - C_in)))      # (C8, K, c_in_p)
    if merge_taps:
        w_arg = w3.reshape(C8, K * c_in_p).astype(compute_dtype)
        w_spec = pl.BlockSpec((C8, K * c_in_p), lambda i: (0, 0))
        scr = pltpu.VMEM((K * c_in_p, M_tile), compute_dtype)            # tap-gather buffer
    else:
        w_arg = jnp.transpose(w3, (1, 0, 2)).astype(compute_dtype)       # (K, C8, c_in_p)
        w_spec = pl.BlockSpec((K, C8, c_in_p), lambda i: (0, 0, 0))
        scr = pltpu.VMEM((C8, M_tile), jnp.float32)                      # f32 accumulator

    conv_flat, stats = pl.pallas_call(
        functools.partial(_conv_stats_kernel, taps=taps, c_in=c_in_p, t_blk=t_blk,
                          nvp=NVp, t_out=T_out, merge_taps=merge_taps),
        grid=(G,),
        in_specs=[
            pl.BlockSpec((s, c_in_p, M_tile), lambda i: (0, 0, i)),                 # main tile
            pl.BlockSpec((s, c_in_p, h_rows * NVp),
                         lambda i: (0, 0, (i + 1) * (t_blk // h_rows))),            # halo tile
            w_spec,                                                                 # weights
        ],
        out_specs=[
            pl.BlockSpec((C8, M_tile), lambda i: (0, i)),                           # conv tile
            pl.BlockSpec((1, C8, 2), lambda i: (i, 0, 0)),                          # partial stats
        ],
        out_shape=[
            jax.ShapeDtypeStruct((C8, T_out_pad * NVp), compute_dtype),
            jax.ShapeDtypeStruct((G, C8, 2), jnp.float32),
        ],
        scratch_shapes=[scr],
        compiler_params=pltpu.CompilerParams(
            dimension_semantics=("parallel",), vmem_limit_bytes=vmem_limit),
    )(xf, xf, w_arg)

    # Tiny cross-tile reduction; fold BN into a per-channel affine (scale, shift).
    # TODO(synk): E[x^2]-E[x]^2 in f32 can cancel for huge T_out*N*V with |mean| >> std; it is
    # accepted here (BN re-normalizes) — switch to Chan's parallel variance if that regime hits.
    count = float(T_out * NV)
    ssum = jnp.sum(stats[:, :C_out, 0], axis=0)
    ssq = jnp.sum(stats[:, :C_out, 1], axis=0)
    mean = ssum / count
    var = jnp.maximum(ssq / count - mean * mean, 0.0)
    scale = gamma.astype(jnp.float32) * lax.rsqrt(var + eps)
    shift = beta.astype(jnp.float32) - mean * scale

    # Pass 2 is plain jnp so XLA fuses the per-channel affine into the layout-change copy
    # (read conv + write y, instead of a separate Pallas pass's extra read/write pair).
    conv3 = conv_flat.reshape(C8, T_out_pad, NVp)[:C_out, :T_out, :NV].astype(jnp.float32)
    y = conv3 * scale[:, None, None] + shift[:, None, None]
    y = y.reshape(C_out, T_out, N, V)
    return jnp.transpose(y, (2, 0, 1, 3))    # back to NCHW


def temporal_conv_reference(x, weight, bias, gamma, beta, *, kernel_size, stride=1,
                            dilation=1, eps=1e-5):
    """Pure-JAX reference matching torch semantics (training-mode BN forward)."""
    K = kernel_size
    pad = (K + (K - 1) * (dilation - 1) - 1) // 2
    conv = lax.conv_general_dilated(
        x, weight,
        window_strides=(stride, 1),
        padding=((pad, pad), (0, 0)),
        rhs_dilation=(dilation, 1),
        dimension_numbers=("NCHW", "OIHW", "NCHW"),
        precision=lax.Precision.HIGHEST,
    )
    conv = conv + bias[None, :, None, None]
    mean = jnp.mean(conv, axis=(0, 2, 3), keepdims=True)
    var = jnp.mean((conv - mean) ** 2, axis=(0, 2, 3), keepdims=True)
    return (conv - mean) * lax.rsqrt(var + eps) * gamma[None, :, None, None] + beta[None, :, None, None]


if __name__ == "__main__":
    # Small, deterministic config: N=2, C_in=4, C_out=8, T=16, V=16, kernel_size=5
    N, C_in, C_out, T, V = 2, 4, 8, 16, 16
    kernel_size, stride, dilation = 5, 1, 1

    key = jax.random.PRNGKey(0)
    kx, kw, kb, kg, kbeta = jax.random.split(key, 5)
    x = jax.random.normal(kx, (N, C_in, T, V), dtype=jnp.float32)
    weight = 0.1 * jax.random.normal(kw, (C_out, C_in, kernel_size, 1), dtype=jnp.float32)
    bias = 0.05 * jax.random.normal(kb, (C_out,), dtype=jnp.float32)
    gamma = 1.0 + 0.1 * jax.random.normal(kg, (C_out,), dtype=jnp.float32)
    beta = 0.1 * jax.random.normal(kbeta, (C_out,), dtype=jnp.float32)

    ref = jax.block_until_ready(temporal_conv_reference(
        x, weight, bias, gamma, beta,
        kernel_size=kernel_size, stride=stride, dilation=dilation))

    # Production path: bf16 operands and bf16 conv intermediate; small tiles so the demo
    # exercises >1 grid block and the halo tile.
    out_bf16 = jax.block_until_ready(temporal_conv(
        x, weight, bias, gamma, beta,
        kernel_size=kernel_size, stride=stride, dilation=dilation,
        block_lanes=1024, compute_dtype=jnp.bfloat16))
    assert out_bf16.shape == ref.shape, (out_bf16.shape, ref.shape)
    if not jnp.allclose(out_bf16, ref, atol=5e-2, rtol=5e-2):
        err = float(jnp.max(jnp.abs(out_bf16 - ref)))
        raise AssertionError(f"bf16 path mismatch vs reference, max abs err = {err}")

    # f32-operand path with a ragged last tile (t_blk=12 vs T_out=16) so the pl.when-gated
    # stats masking is exercised; tighter tolerance.
    out_f32 = jax.block_until_ready(temporal_conv(
        x, weight, bias, gamma, beta,
        kernel_size=kernel_size, stride=stride, dilation=dilation,
        block_lanes=1536, compute_dtype=jnp.float32))
    if not jnp.allclose(out_f32, ref, atol=5e-3, rtol=5e-3):
        err = float(jnp.max(jnp.abs(out_f32 - ref)))
        raise AssertionError(f"f32 path mismatch vs reference, max abs err = {err}")

    # Per-tap accumulation path (auto-selected when K*C_in is already MXU-deep), forced here at
    # small shapes for coverage of the no-gather code path.
    out_tap = jax.block_until_ready(temporal_conv(
        x, weight, bias, gamma, beta,
        kernel_size=kernel_size, stride=stride, dilation=dilation,
        block_lanes=1024, compute_dtype=jnp.float32, merge_taps=False))
    if not jnp.allclose(out_tap, ref, atol=5e-3, rtol=5e-3):
        err = float(jnp.max(jnp.abs(out_tap - ref)))
        raise AssertionError(f"per-tap path mismatch vs reference, max abs err = {err}")

    # TODO(synk): BatchNorm running_mean/running_var in-place updates (a training side effect
    # that does not affect the returned tensor) are not modeled.
    print("KERNEL_OK")
</pallas_src>

<mosaic_0001>
module attributes {stable_mosaic.version = 11 : i64} {
  func.func @_conv_stats_kernel(%arg0: i32, %arg1: memref<1x4x1024xbf16, #tpu.memory_space<vmem>>, %arg2: memref<1x4x512xbf16, #tpu.memory_space<vmem>>, %arg3: memref<8x20xbf16, #tpu.memory_space<vmem>>, %arg4: memref<8x1024xbf16, #tpu.memory_space<vmem>>, %arg5: memref<1x8x2xf32, #tpu.memory_space<vmem>>, %arg6: memref<20x1024xbf16, #tpu.memory_space<vmem>>) attributes {dimension_semantics = [#tpu.dimension_semantics<parallel>], iteration_bounds = array<i64: 2>, scalar_prefetch = 0 : i64, scratch_operands = 1 : i64, tpu.core_type = #tpu.core_type<tc>, window_params = [{transform_indices = @transform_0, window_bounds = array<i64: 1, 4, 1024>}, {transform_indices = @transform_1, window_bounds = array<i64: 1, 4, 512>}, {pipeline_mode = #tpu.pipeline_mode<synchronous>, transform_indices = @transform_2, window_bounds = array<i64: 8, 20>}, {transform_indices = @transform_3, window_bounds = array<i64: 8, 1024>}, {transform_indices = @transform_4, window_bounds = array<i64: 1, 8, 2>}]} {
    %c0 = arith.constant 0 : index
    %c0_0 = arith.constant 0 : index
    %c0_1 = arith.constant 0 : index
    %0 = vector.load %arg1[%c0, %c0_0, %c0_1] : memref<1x4x1024xbf16, #tpu.memory_space<vmem>>, vector<1x4x1024xbf16>
    %1 = vector.shape_cast %0 : vector<1x4x1024xbf16> to vector<4x1024xbf16>
    %c0_2 = arith.constant 0 : index
    %c0_3 = arith.constant 0 : index
    %2 = vector.load %arg6[%c0_2, %c0_3] : memref<20x1024xbf16, #tpu.memory_space<vmem>>, vector<4x1024xbf16>
    tpu.vector_store %arg6[%c0_2, %c0_3], %1 {strides = array<i32>} : memref<20x1024xbf16, #tpu.memory_space<vmem>>, vector<4x1024xbf16>,
    %c0_4 = arith.constant 0 : index
    %c0_5 = arith.constant 0 : index
    %c128 = arith.constant 128 : index
    %3 = vector.load %arg1[%c0_4, %c0_5, %c128] : memref<1x4x1024xbf16, #tpu.memory_space<vmem>>, vector<1x4x896xbf16>
    %4 = vector.shape_cast %3 : vector<1x4x896xbf16> to vector<4x896xbf16>
    %c4 = arith.constant 4 : index
    %c0_6 = arith.constant 0 : index
    %5 = vector.load %arg6[%c4, %c0_6] : memref<20x1024xbf16, #tpu.memory_space<vmem>>, vector<4x896xbf16>
    tpu.vector_store %arg6[%c4, %c0_6], %4 {strides = array<i32>} : memref<20x1024xbf16, #tpu.memory_space<vmem>>, vector<4x896xbf16>,
    %c0_7 = arith.constant 0 : index
    %c0_8 = arith.constant 0 : index
    %c0_9 = arith.constant 0 : index
    %6 = vector.load %arg2[%c0_7, %c0_8, %c0_9] : memref<1x4x512xbf16, #tpu.memory_space<vmem>>, vector<1x4x128xbf16>
    %7 = vector.shape_cast %6 : vector<1x4x128xbf16> to vector<4x128xbf16>
    %c4_10 = arith.constant 4 : index
    %c896 = arith.constant 896 : index
    %8 = vector.load %arg6[%c4_10, %c896] : memref<20x1024xbf16, #tpu.memory_space<vmem>>, vector<4x128xbf16>
    tpu.vector_store %arg6[%c4_10, %c896], %7 {strides = array<i32>} : memref<20x1024xbf16, #tpu.memory_space<vmem>>, vector<4x128xbf16>,
    %c0_11 = arith.constant 0 : index
    %c0_12 = arith.constant 0 : index
    %c256 = arith.constant 256 : index
    %9 = vector.load %arg1[%c0_11, %c0_12, %c256] : memref<1x4x1024xbf16, #tpu.memory_space<vmem>>, vector<1x4x768xbf16>
    %10 = vector.shape_cast %9 : vector<1x4x768xbf16> to vector<4x768xbf16>
    %c8 = arith.constant 8 : index
    %c0_13 = arith.constant 0 : index
    %11 = vector.load %arg6[%c8, %c0_13] : memref<20x1024xbf16, #tpu.memory_space<vmem>>, vector<4x768xbf16>
    tpu.vector_store %arg6[%c8, %c0_13], %10 {strides = array<i32>} : memref<20x1024xbf16, #tpu.memory_space<vmem>>, vector<4x768xbf16>,
    %c0_14 = arith.constant 0 : index
    %c0_15 = arith.constant 0 : index
    %c0_16 = arith.constant 0 : index
    %12 = vector.load %arg2[%c0_14, %c0_15, %c0_16] : memref<1x4x512xbf16, #tpu.memory_space<vmem>>, vector<1x4x256xbf16>
    %13 = vector.shape_cast %12 : vector<1x4x256xbf16> to vector<4x256xbf16>
    %c8_17 = arith.constant 8 : index
    %c768 = arith.constant 768 : index
    %14 = vector.load %arg6[%c8_17, %c768] : memref<20x1024xbf16, #tpu.memory_space<vmem>>, vector<4x256xbf16>
    tpu.vector_store %arg6[%c8_17, %c768], %13 {strides = array<i32>} : memref<20x1024xbf16, #tpu.memory_space<vmem>>, vector<4x256xbf16>,
    %c0_18 = arith.constant 0 : index
    %c0_19 = arith.constant 0 : index
    %c384 = arith.constant 384 : index
    %15 = vector.load %arg1[%c0_18, %c0_19, %c384] : memref<1x4x1024xbf16, #tpu.memory_space<vmem>>, vector<1x4x640xbf16>
    %16 = vector.shape_cast %15 : vector<1x4x640xbf16> to vector<4x640xbf16>
    %c12 = arith.constant 12 : index
    %c0_20 = arith.constant 0 : index
    %17 = vector.load %arg6[%c12, %c0_20] : memref<20x1024xbf16, #tpu.memory_space<vmem>>, vector<4x640xbf16>
    tpu.vector_store %arg6[%c12, %c0_20], %16 {strides = array<i32>} : memref<20x1024xbf16, #tpu.memory_space<vmem>>, vector<4x640xbf16>,
    %c0_21 = arith.constant 0 : index
    %c0_22 = arith.constant 0 : index
    %c0_23 = arith.constant 0 : index
    %18 = vector.load %arg2[%c0_21, %c0_22, %c0_23] : memref<1x4x512xbf16, #tpu.memory_space<vmem>>, vector<1x4x384xbf16>
    %19 = vector.shape_cast %18 : vector<1x4x384xbf16> to vector<4x384xbf16>
    %c12_24 = arith.constant 12 : index
    %c640 = arith.constant 640 : index
    %20 = vector.load %arg6[%c12_24, %c640] : memref<20x1024xbf16, #tpu.memory_space<vmem>>, vector<4x384xbf16>
    tpu.vector_store %arg6[%c12_24, %c640], %19 {strides = array<i32>} : memref<20x1024xbf16, #tpu.memory_space<vmem>>, vector<4x384xbf16>,
    %c0_25 = arith.constant 0 : index
    %c0_26 = arith.constant 0 : index
    %c512 = arith.constant 512 : index
    %21 = vector.load %arg1[%c0_25, %c0_26, %c512] : memref<1x4x1024xbf16, #tpu.memory_space<vmem>>, vector<1x4x512xbf16>
    %22 = vector.shape_cast %21 : vector<1x4x512xbf16> to vector<4x512xbf16>
    %c16 = arith.constant 16 : index
    %c0_27 = arith.constant 0 : index
    %23 = vector.load %arg6[%c16, %c0_27] : memref<20x1024xbf16, #tpu.memory_space<vmem>>, vector<4x512xbf16>
    tpu.vector_store %arg6[%c16, %c0_27], %22 {strides = array<i32>} : memref<20x1024xbf16, #tpu.memory_space<vmem>>, vector<4x512xbf16>,
    %c0_28 = arith.constant 0 : index
    %c0_29 = arith.constant 0 : index
    %c0_30 = arith.constant 0 : index
    %24 = vector.load %arg2[%c0_28, %c0_29, %c0_30] : memref<1x4x512xbf16, #tpu.memory_space<vmem>>, vector<1x4x512xbf16>
    %25 = vector.shape_cast %24 : vector<1x4x512xbf16> to vector<4x512xbf16>
    %c16_31 = arith.constant 16 : index
    %c512_32 = arith.constant 512 : index
    %26 = vector.load %arg6[%c16_31, %c512_32] : memref<20x1024xbf16, #tpu.memory_space<vmem>>, vector<4x512xbf16>
    tpu.vector_store %arg6[%c16_31, %c512_32], %25 {strides = array<i32>} : memref<20x1024xbf16, #tpu.memory_space<vmem>>, vector<4x512xbf16>,
    %c0_33 = arith.constant 0 : index
    %c0_34 = arith.constant 0 : index
    %27 = vector.load %arg3[%c0_33, %c0_34] : memref<8x20xbf16, #tpu.memory_space<vmem>>, vector<8x20xbf16>
    %c0_35 = arith.constant 0 : index
    %c0_36 = arith.constant 0 : index
    %28 = vector.load %arg6[%c0_35, %c0_36] : memref<20x1024xbf16, #tpu.memory_space<vmem>>, vector<20x1024xbf16>
    %cst = arith.constant dense<0.000000e+00> : vector<8x1024xf32>
    %29 = tpu.matmul %27, %28, %cst {dimension_numbers = #tpu.dot_dimension_numbers<[1], [0], [0], [1], [0, 0, 1, 1], [], []>} : vector<8x20xbf16>, vector<20x1024xbf16>, vector<8x1024xf32> -> vector<8x1024xf32>
    %30 = arith.truncf %29 : vector<8x1024xf32> to vector<8x1024xbf16>
    %c0_37 = arith.constant 0 : index
    %c0_38 = arith.constant 0 : index
    %31 = vector.load %arg4[%c0_37, %c0_38] : memref<8x1024xbf16, #tpu.memory_space<vmem>>, vector<8x1024xbf16>
    tpu.vector_store %arg4[%c0_37, %c0_38], %30 {strides = array<i32>} : memref<8x1024xbf16, #tpu.memory_space<vmem>>, vector<8x1024xbf16>,
    %c0_39 = arith.constant 0 : index
    %c0_40 = arith.constant 0 : index
    %32 = vector.load %arg4[%c0_39, %c0_40] : memref<8x1024xbf16, #tpu.memory_space<vmem>>, vector<8x1024xbf16>
    %33 = arith.extf %32 : vector<8x1024xbf16> to vector<8x1024xf32>
    %cst_41 = arith.constant dense<0.000000e+00> : vector<8xf32>
    %34 = vector.multi_reduction <add>, %33, %cst_41 [1] : vector<8x1024xf32> to vector<8xf32>
    %35 = vector.shape_cast %34 : vector<8xf32> to vector<8x1xf32>
    %36 = vector.shape_cast %35 : vector<8x1xf32> to vector<1x8x1xf32>
    %c0_42 = arith.constant 0 : index
    %c0_43 = arith.constant 0 : index
    %c0_44 = arith.constant 0 : index
    %37 = vector.load %arg5[%c0_42, %c0_43, %c0_44] : memref<1x8x2xf32, #tpu.memory_space<vmem>>, vector<1x8x1xf32>
    tpu.vector_store %arg5[%c0_42, %c0_43, %c0_44], %36 {strides = array<i32>} : memref<1x8x2xf32, #tpu.memory_space<vmem>>, vector<1x8x1xf32>,
    %38 = arith.mulf %33, %33 : vector<8x1024xf32>
    %cst_45 = arith.constant dense<0.000000e+00> : vector<8xf32>
    %39 = vector.multi_reduction <add>, %38, %cst_45 [1] : vector<8x1024xf32> to vector<8xf32>
    %40 = vector.shape_cast %39 : vector<8xf32> to vector<8x1xf32>
    %41 = vector.shape_cast %40 : vector<8x1xf32> to vector<1x8x1xf32>
    %c0_46 = arith.constant 0 : index
    %c0_47 = arith.constant 0 : index
    %c1 = arith.constant 1 : index
    %42 = vector.load %arg5[%c0_46, %c0_47, %c1] : memref<1x8x2xf32, #tpu.memory_space<vmem>>, vector<1x8x1xf32>
    tpu.vector_store %arg5[%c0_46, %c0_47, %c1], %41 {strides = array<i32>} : memref<1x8x2xf32, #tpu.memory_space<vmem>>, vector<1x8x1xf32>,
    return
  }
  func.func @transform_0(%arg0: i32) -> (i32, i32, i32) {
    %c0_i32 = arith.constant 0 : i32
    %c0_i32_0 = arith.constant 0 : i32
    %c0_i32_1 = arith.constant 0 : i32
    return %c0_i32, %c0_i32_0, %arg0 : i32, i32, i32
  }
  func.func @transform_1(%arg0: i32) -> (i32, i32, i32) {
    %c1_i32 = arith.constant 1 : i32
    %0 = arith.addi %arg0, %c1_i32 : i32
    %c2_i32 = arith.constant 2 : i32
    %1 = arith.muli %0, %c2_i32 : i32
    %c0_i32 = arith.constant 0 : i32
    %c0_i32_0 = arith.constant 0 : i32
    %c0_i32_1 = arith.constant 0 : i32
    return %c0_i32, %c0_i32_0, %1 : i32, i32, i32
  }
  func.func @transform_2(%arg0: i32) -> (i32, i32) {
    %c0_i32 = arith.constant 0 : i32
    %c0_i32_0 = arith.constant 0 : i32
    %c0_i32_1 = arith.constant 0 : i32
    return %c0_i32, %c0_i32_0 : i32, i32
  }
  func.func @transform_3(%arg0: i32) -> (i32, i32) {
    %c0_i32 = arith.constant 0 : i32
    %c0_i32_0 = arith.constant 0 : i32
    return %c0_i32, %arg0 : i32, i32
  }
  func.func @transform_4(%arg0: i32) -> (i32, i32, i32) {
    %c0_i32 = arith.constant 0 : i32
    %c0_i32_0 = arith.constant 0 : i32
    %c0_i32_1 = arith.constant 0 : i32
    return %arg0, %c0_i32, %c0_i32_0 : i32, i32, i32
  }
}

</mosaic_0001>

<bundles_post_ra>
// kernel: tpu_custom_call.1
= control target key start
LH: loop header
LB: loop body
LE: loop exit
PB: predicated region body
PF: predicated region fallthrough
CT: control target
= control target key end

     0   :  { %s1700_s0 = inlined_call_operand.hbm [shape: bf16[1,4,3072], index: 0, kind: input, shape index: {}]   ;;  %s1701_s1 = inlined_call_operand.hbm [shape: bf16[1,4,3072], index: 1, kind: input, shape index: {}]   ;;  %s1702_s2 = inlined_call_operand.hbm [shape: bf16[8,20], index: 2, kind: input, shape index: {}]   ;;  %s1703_s3 = inlined_call_operand.hbm [shape: bf16[8,2048], index: 3, kind: output, shape index: {0}]   ;;  %s1704_s4 = inlined_call_operand.vmem [shape: f32[2,8,2], index: 4, kind: output, shape index: {1}]  }
   0x1   :  { %1713 = sst [smem:[#allocation16_spill]] %s1702_s2 }
   0x2   :  { %10 = vsyncpa [#allocation4], 0 }
   0x3   :  { %12 = vsyncpa [#allocation4 + $0x1], 0 }
   0x4   :  { %13 = vsyncpa [#allocation7], 0 }
   0x5   :  { %15 = vsyncpa [#allocation7 + $0x1], 0 }
   0x6   :  { %16 = vsyncpa [#allocation5], 0 }
   0x7   :  { %18 = vsyncpa [#allocation5 + $0x1], 0  ;;  %s1411_s15 = smov 0   ;;  %s1413_s16 = smov 0  }
   0x8   :  { %s1415_s17 = smov 0   ;;  %s1417_s18 = smov 0  }
   0x9   :  { %s1419_s19 = smov 0   ;;  %s1421_s20 = smov 0  }
   0xa   :  { %s1423_s21 = smov 0  }
   0xb LB: > { %1714 = sst [smem:[#allocation14_spill]] %s1375_s20  ;;  %s1445_s22 = sadd.s32 4294967295, %s1379_s21   ;;  %s1379_s21 = sphi %s1423_s21, %s1744_s21   ;;  %s1375_s20 = sphi %s1421_s20, %s1738_s20   ;;  %s1371_s19 = sphi %s1419_s19, %s1743_s19   ;;  %s1367_s18 = sphi %s1417_s18, %s1742_s18   ;;  %s1363_s17 = sphi %s1415_s17, %s1741_s17   ;;  %s1359_s16 = sphi %s1413_s16, %s1740_s16   ;;  %s1355_s15 = sphi %s1411_s15, %s1739_s15  }
   0xc   : > { %s1015_s23 = sadd.s32 4294967294, %s1379_s21   ;;  %p44_p0 = scmp.ne.s32.totalorder %s1371_s19, %s1367_s18 }
   0xd   : > { %p1705_p1 = scmp.eq.s32.totalorder %s1445_s22, 0  ;;  %p74_p2 = scmp.ne.s32.totalorder %s1359_s16, %s1355_s15 }
   0xe   : > { %p125_p5 = scmp.eq.s32.totalorder %s1015_s23, 1  ;;  %p1018_p7 = scmp.ge.s32.totalorder %s1379_s21, 1 }
   0xf   : > { %p1455_p4 = por %p1705_p1, %p44_p0  ;;  %p1461_p6 = por %p74_p2, %p1705_p1 }
  0x10   : > { %p1466_p8 = por %p125_p5, %p44_p0  ;;  %p158_p9 = scmp.lt.s32.totalorder %s1379_s21, 3 }
  0x11   : > { %s1715_s24 = scalar_select %p1455_p4, 1, 0 }
  0x12   : > { %s1716_s25 = scalar_select %p1461_p6, 1, 0 }
  0x13   : > { %s1717_s26 = scalar_select %p1466_p8, 1, 0 }
  0x14   : > { %p1471_p10 = pnand %p1018_p7, %p158_p9  ;;  %s1381_s28 = smov [#allocation8]  }
  0x15   : > { %s171_s29 = sshll.u32 %s1381_s28, 4  ;;  %s1479_s30 = sadd.s32 1, %s1379_s21   ;;  %s172_s29 = int_to_ptr.vmem [resolvable:$true] %s171_s29 }
  0x16   : > { %s1718_s27 = scalar_select %p1471_p10, 1, 0 }
  0x17   : > { %p1109_p12 = pneg %p1471_p10  ;;  %s28_s6 = ssub.s32 %s1379_s21, %s1479_s30 }
  0x18   : > { %p1489_p0 = scmp.eq.s32.totalorder %s28_s6, 0  ;;  %s31_s8 = sadd.s32 1, %s1375_s20 }
  0x19   : > { %p1483_p13 = pnand %p1109_p12, %p1705_p1  ;;  %p38_p2 = scmp.ne.s32.totalorder %s1375_s20, %s1371_s19 }
  0x1a   : > { %s1211_s9 = scalar_lea.vmem %s172_s29, 64  ;;  %p1219_p3 = scmp.lt.s32.totalorder %s172_s29, %s172_s29 }
  0x1b   : > { %p1202_p5 = pneg %p1483_p13  ;;  %p1212_p7 = scmp.ne.s32.totalorder %s172_s29, %s1211_s9 }
  0x1c   : > { %p1220_p8 = scmp.lt.s32.totalorder %s1211_s9, %s1211_s9 }
  0x1d   : > { %p1214_p9 = pnand %p1212_p7, %p1202_p5 }
  0x1e   : > { %p1221_p12 = por %p1220_p8, %p1219_p3 }
  0x1f   : > { %p1215_p11 = pneg %p1214_p9 }
  0x21   : > { %p1222_p1 = pnand %p1221_p12, %p1215_p11 }
  0x23   : > { %1225 = shalt.err (!%p1222_p1)
}
  0x24   : > { %s1721_s2 = sld [smem:[#allocation16_spill]]  ;;  %p1708_p1 = scmp.eq.s32.totalorder %s1379_s21, 0 }
  0x25   : > { %s1506_s12 = scalar_select %p1489_p0, %s1375_s20, %s31_s8  }
  0x26   : > { %p1723_p3 = scmp.eq.s32.totalorder %s1445_s22, 1  ;;  %p1707_p11 = scmp.lt.s32.totalorder %s1379_s21, 2 }
  0x27   : > { %1722 = sst [smem:[#allocation15_spill]] %s1506_s12  ;;  %s182_s14 = sand.u32 1, %s1375_s20  }
  0x28   : > { %p1514_p8 = por %p1723_p3, %p38_p2  ;;  %p40_p5 = por %p1708_p1, %p38_p2 }
  0x29   : > { %s1021_s15 = sshll.u32 %s182_s14, 4  ;;  %s1091_s23 = sshll.u32 %s1379_s21, 8 }
  0x2a   : > { %1112 = dma.hbm_to_vmem [thread:$0]  (!%p1483_p13), %s1721_s2, 64, %s172_s29, [#allocation7]  }
  0x2b   : > { %s1724_s13 = scalar_select %p1514_p8, 1, 0 }
  0x2c   : > { %s1529_s29 = scalar_lea.hbm %s1700_s0, %s1091_s23  ;;  %s186_s6 = scalar_lea.vmem [#allocation3], %s1021_s15 }
  0x2d   : > { %s194_s7 = sshll.u32 %s186_s6, 4  ;;  %p1533_p13 = pnand %p1707_p11, %p40_p5  ;;  %s195_s7 = int_to_ptr.vmem [resolvable:$true] %s194_s7 }
  0x2e   : > { %s1540_s11 = scalar_lea.hbm %s1701_s1, %s1091_s23  ;;  %s183_s28 = scalar_lea.sflag [#allocation4], %s182_s14 }
  0x2f   : > { %s1226_s5 = scalar_lea.hbm %s1529_s29, 256  ;;  %p1228_p2 = pneg %p1533_p13 }
  0x30   : > { %p1227_p0 = scmp.ne.s32.totalorder %s1529_s29, %s1226_s5  ;;  %s1231_s2 = scalar_lea.hbm %s1700_s0, 768 }
  0x31   : > { %p1232_p12 = scmp.lt.s32.totalorder %s1529_s29, %s1700_s0  ;;  %p1233_p3 = scmp.lt.s32.totalorder %s1231_s2, %s1226_s5 }
  0x32   : > { %p1229_p7 = pnand %p1228_p2, %p1227_p0 }
  0x33   : > { %p1234_p5 = por %p1233_p3, %p1232_p12 }
  0x34   : > { %p1230_p9 = pneg %p1229_p7 }
  0x36   : > { %p1235_p11 = pnand %p1234_p5, %p1230_p9 }
  0x38   : > { %1238 = shalt.err (!%p1235_p11)
}
  0x39   : > { %s1239_s23 = scalar_lea.vmem %s195_s7, 256  ;;  %s1382_s14 = smov [#allocation3]  }
  0x3a   : > { %p1240_p1 = scmp.ne.s32.totalorder %s195_s7, %s1239_s23  ;;  %s1244_s9 = sshll.u32 %s1382_s14, 4  ;;  %s1245_s9 = int_to_ptr.vmem [resolvable:$false] %s1244_s9 }
  0x3b   : > { %s1246_s10 = scalar_lea.vmem %s1245_s9, 512  ;;  %p1247_p0 = scmp.lt.s32.totalorder %s195_s7, %s1245_s9 }
  0x3c   : > { %p1242_p8 = pnand %p1240_p1, %p1228_p2  ;;  %p1248_p7 = scmp.lt.s32.totalorder %s1246_s10, %s1239_s23 }
  0x3e   : > { %p1243_p6 = pneg %p1242_p8  ;;  %p1249_p4 = por %p1248_p7, %p1247_p0 }
  0x40   : > { %p1250_p10 = pnand %p1249_p4, %p1243_p6 }
  0x42   : > { %1253 = shalt.err (!%p1250_p10)
}
  0x43   : > { %1116 = dma.hbm_to_vmem [thread:$0]  (!%p1533_p13), %s1529_s29, 256, %s195_s7, %s183_s28  }
  0x44   : > { %s1087_s2 = sshll.u32 %s1379_s21, 1  ;;  %s61_s12 = sadd.s32 1, %s1363_s17 }
  0x45   : > { %s1088_s20 = sadd.s32 2, %s1087_s2  ;;  %p68_p4 = scmp.ne.s32.totalorder %s1363_s17, %s1359_s16 }
  0x46   : > { %s1090_s5 = sadd.s32 2, %s1088_s20  ;;  %s201_s8 = sand.u32 1, %s1379_s21  }
  0x47   : > { %s58_s15 = ssub.s32 %s1088_s20, %s1090_s5  ;;  %p1726_p10 = scmp.eq.s32.totalorder %s1379_s21, 0 }
  0x48   : > { %p59_p6 = scmp.eq.s32.totalorder %s58_s15, 0  ;;  %s203_s6 = sand.u32 1, %s1363_s17  }
  0x49   : > { %p70_p1 = por %p68_p4, %p1726_p10  ;;  %s1024_s14 = sshll.u32 %s203_s6, 3 }
  0x4a   : > { %s1565_s23 = scalar_select %p59_p6, %s1363_s17, %s61_s12  }
  0x4b   : > { %s1568_s9 = scalar_lea.hbm %s1540_s11, 256  ;;  %p1727_p8 = scmp.lt.s32.totalorder %s1379_s21, 2 }
  0x4c   : > { %s205_s7 = scalar_lea.vmem [#allocation6], %s1024_s14  ;;  %s202_s10 = scalar_lea.sflag [#allocation7], %s201_s8 }
  0x4d   : > { %p1572_p11 = pnand %p1727_p8, %p70_p1  ;;  %s215_s28 = sshll.u32 %s205_s7, 4  ;;  %s216_s28 = int_to_ptr.vmem [resolvable:$true] %s215_s28 }
  0x4e   : > { %s1282_s2 = scalar_lea.hbm %s1540_s11, 384  ;;  %s1259_s5 = scalar_lea.hbm %s1701_s1, 768 }
  0x4f   : > { %p1255_p13 = scmp.ne.s32.totalorder %s1568_s9, %s1282_s2  ;;  %p1256_p2 = pneg %p1572_p11 }
  0x50   : > { %p1260_p3 = scmp.lt.s32.totalorder %s1568_s9, %s1701_s1  ;;  %p1261_p5 = scmp.lt.s32.totalorder %s1259_s5, %s1282_s2 }
  0x51   : > { %p1257_p9 = pnand %p1256_p2, %p1255_p13 }
  0x52   : > { %p1262_p0 = por %p1261_p5, %p1260_p3 }
  0x53   : > { %p1258_p12 = pneg %p1257_p9 }
  0x55   : > { %p1263_p7 = pnand %p1262_p0, %p1258_p12 }
  0x57   : > { %1266 = shalt.err (!%p1263_p7)
}
  0x58   : > { %s1267_s14 = scalar_lea.vmem %s216_s28, 128  ;;  %s1383_s11 = smov [#allocation6]  }
  0x59   : > { %p1268_p4 = scmp.ne.s32.totalorder %s216_s28, %s1267_s14  ;;  %s1272_s8 = sshll.u32 %s1383_s11, 4  ;;  %s1273_s8 = int_to_ptr.vmem [resolvable:$false] %s1272_s8 }
  0x5a   : > { %s1274_s7 = scalar_lea.vmem %s1273_s8, 256  ;;  %p1275_p1 = scmp.lt.s32.totalorder %s216_s28, %s1273_s8 }
  0x5b   : > { %p1270_p6 = pnand %p1268_p4, %p1256_p2  ;;  %p1276_p8 = scmp.lt.s32.totalorder %s1274_s7, %s1267_s14 }
  0x5d   : > { %p1271_p10 = pneg %p1270_p6  ;;  %p1277_p13 = por %p1276_p8, %p1275_p1 }
  0x5f   : > { %p1278_p9 = pnand %p1277_p13, %p1271_p10 }
  0x61   : > { %1281 = shalt.err (!%p1278_p9)
}
  0x62   : > { %1119 = dma.hbm_to_vmem [thread:$0]  (!%p1572_p11), %s1568_s9, 128, %s216_s28, %s202_s10  }
  0x63   : > { %p1729_p12 = scmp.ne.s32.totalorder %s1718_s27, 0 }
  0x64   : > { %s1593_s2 = sand.u32 (!%p1729_p12), 1, %s1371_s19   ;;  %p1730_p2 = scmp.ne.s32.totalorder (!%p1729_p12), %s1715_s24, 0 }
  0x65   : > { %224 = sbr.rel (%p1729_p12) target bundleno = 502 (0x1f6), region = 32  ;;  %s1027_s20 = sshll.u32 (!%p1729_p12), %s1593_s2, 4 }
  0x66   : > { %s227_s12 = scalar_lea.sflag (!%p1729_p12), [#allocation4], %s1593_s2  ;;  %s1597_s5 = scalar_lea.vmem (!%p1729_p12), [#allocation3], %s1027_s20 }
  0x6a   : > { %1338 = dma.done.wait (%p1730_p2), %s227_s12, 256  }
  0x6b   : > { %1340 = vsyncadd (%p1730_p2), %s227_s12, 4294967040  ;;  %s235_s27 = sand.u32 1, %s1445_s22   ;;  %s237_s9 = sand.u32 1, %s1359_s16  }
  0x6c   : > { %s1028_s29 = sshll.u32 %s237_s9, 3  ;;  %s236_s28 = scalar_lea.sflag [#allocation7], %s235_s27 }
  0x6d   : > { %s1605_s10 = scalar_lea.vmem [#allocation6], %s1028_s29  ;;  %p1731_p11 = scmp.ne.s32.totalorder %s1716_s25, 0 }
  0x6f   : > { %1342 = dma.done.wait (%p1731_p11), %s236_s28, 128  }
  0x70   : > { %1344 = vsyncadd (%p1731_p11), %s236_s28, 4294967168  ;;  %p1732_p3 = scmp.eq.s32.totalorder %s1445_s22, 0 }
  0x72   : > { %1346 = dma.done.wait (%p1732_p3), [#allocation7], 64   ;;  %p1733_p5 = pmov %p1732_p3 }
  0x73   : > { %v1384_v0 = vmov 0   ;;  %v480_v1 = vld [vmem:[%s1597_s5 + $0x8] sm:$0xff]  ;;  %v287_v2 = vld [vmem:[%s1597_s5] sm:$0xff]  ;;  %vm599_vm0 = vcmask 1041408   ;;  %vm595_vm1 = vcmask 162816   ;;  %s1030_s24 = sshll.u32 %s1593_s2, 5 }
  0x74   : > { %1348 = vsyncadd (%p1733_p5), [#allocation7], 4294967232  ;;  %656 = vmatprep.mubr.bf16.mxu0 %v1384_v0  ;;  %697 = vmatprep.mubr.bf16.mxu1 %v1384_v0  ;;  %v329_v3 = vld [vmem:[%s1597_s5 + $0x2] sm:$0xff]  ;;  %v482_v4 = vcombine.high %v480_v1, %v480_v1  ;;  %v291_v8 = vcombine.high %v287_v2, %v287_v2  ;;  %v330_v12 = vld [vmem:[%s1597_s5 + $0xa] sm:$0x3f]  ;;  %s1644_s25 = scalar_lea.vmem [#allocation9], %s1030_s24 }
  0x75   : > { %1050 = vst.sshfl [vmem:[#allocation2 + $0x40] sm:$0xf pattern:$0x76325410] %v480_v1  ;;  %v333_v5 = vcombine.low %v329_v3, %v329_v3  ;;  %v383_v6 = vld [vmem:[%s1597_s5 + $0x4] sm:$0xff]  ;;  %v348_v14 = vcombine.low %v330_v12, %v330_v12  ;;  %s1096_s15 = sshll.u32 %s1445_s22, 9 }
  0x76   : > { %1032 = vst.sshfl [vmem:[#allocation2] sm:$0xf pattern:$0x76325410] %v287_v2  ;;  %v426_v7 = vld [vmem:[%s1597_s5 + $0x6] sm:$0xff]  ;;  %v387_v10 = vcombine.high %v383_v6, %v383_v6  ;;  %s885_s6 = sshll.u32 %s1644_s25, 4  ;;  %s883_s8 = scalar_lea.hbm %s1703_s3, %s1096_s15  ;;  %s886_s6 = int_to_ptr.vmem [resolvable:$true] %s885_s6 }
  0x77   : > { %1037 = vst.sshfl [vmem:[#allocation2 + $0x8] sm:$0xf0 pattern:$0x76325410] %v329_v3  ;;  %v430_v9 = vcombine.low %v426_v7, %v426_v7  ;;  %v501_v11 = vld [vmem:[%s1605_s10] sm:$0xff]  ;;  %s867_s7 = scalar_lea.sflag [#allocation5], %s1593_s2 }
  0x78   : > { %1034 = vst.sshfl [vmem:[#allocation2 + $0x10] sm:$0xf pattern:$0x76325410] %v480_v1  ;;  %v503_v13 = vcombine.high %v501_v11, %v501_v11  ;;  %v459_v16 = vld [vmem:[%s1605_s10] sm:$0x3f] }
  0x79   : > { %1042 = vst.sshfl [vmem:[#allocation2 + $0x20] sm:$0xf pattern:$0x76325410] %v383_v6  ;;  %v461_v18 = vcombine.low %v459_v16, %v459_v16  ;;  %v522_v45 = vld [vmem:[#allocation8] sm:$0xf] }
  0x7a   : > { %1046 = vst.sshfl [vmem:[#allocation2 + $0x28] sm:$0xf0 pattern:$0x76325410] %v426_v7  ;;  %s1283_s20 = scalar_lea.vmem %s886_s6, 512  ;;  %p1734_p7 = scmp.ne.s32.totalorder %s1724_s13, 0 }
  0x7b   : > { %1051 = vst.sshfl [vmem:[#allocation2 + $0x48] sm:$0xf pattern:$0x76325410] %v482_v4  ;;  %p1284_p0 = scmp.ne.s32.totalorder %s886_s6, %s1283_s20  ;;  %s1385_s12 = smov [#allocation9]  }
  0x7c   : > { %1036 = vst.sshfl [vmem:[#allocation2] sm:$0xf0 pattern:$0x76325410] %v333_v5  ;;  %v531_v21 = vld [vmem:[#allocation2 + $0x40] sm:$0x33] }
  0x7d   : > { %1033 = vst.sshfl [vmem:[#allocation2 + $0x8] sm:$0xf pattern:$0x76325410] %v291_v8  ;;  %v1063_v22 = vcombine.high %v531_v21, %v531_v21  ;;  %v1062_v23 = vcombine.low %v531_v21, %v531_v21  ;;  %p1285_p4 = pnand %p1284_p0, %p1734_p7 }
  0x7e   : > { %1052 = vst.sshfl [vmem:[#allocation2 + $0x50] sm:$0xf pattern:$0x76325410] %v501_v11 }
  0x7f   : > { %v1041_v15 = vld.sshfl [vmem:[%s1597_s5 + $0xc] sm:$0x33 pattern:$0x76325410]  ;;  %1070 = vmatprep.subr.msk.bf16.mxu0 %vm599_vm0, %v1063_v22  ;;  %v601_v27 = vsel %vm599_vm0, %v1062_v23, 0  ;;  %p1286_p6 = pneg %p1285_p4 }
  0x80   : > { %1039 = vst.sshfl [vmem:[#allocation2 + $0x18] sm:$0x30 pattern:$0x76325410] %v330_v12  ;;  %414 = vst [vmem:[#allocation2 + $0x30] sm:$0x33] %v1041_v15  ;;  %637 = vmatpush1.bf16.msra.mxu0 %v601_v27 }
  0x81   : > { %1035 = vst.sshfl [vmem:[#allocation2 + $0x18] sm:$0xf pattern:$0x76325410] %v482_v4 }
  0x82   : > { %1045 = vst.sshfl [vmem:[#allocation2 + $0x20] sm:$0xf0 pattern:$0x76325410] %v430_v9  ;;  %v532_v24 = vld [vmem:[#allocation2 + $0x48] sm:$0x33] }
  0x83   : > { %1043 = vst.sshfl [vmem:[#allocation2 + $0x28] sm:$0xf pattern:$0x76325410] %v387_v10  ;;  %v523_v25 = vld [vmem:[#allocation2] sm:$0xff]  ;;  %v1065_v28 = vcombine.high %v532_v24, %v532_v24  ;;  %v1064_v29 = vcombine.low %v532_v24, %v532_v24 }
  0x84   : > { %v1197_v17 = vld [vmem:[%s1597_s5 + $0xe] ss:$0 sps:$4 sm:$0x33]   ;;  %v1199_v19 = vld [vmem:[%s1605_s10] ss:$0 sps:$4 sm:$0x33]  }
  0x85   : > { %1049 = vst.sshfl [vmem:[#allocation2 + $0x3c] sm:$0x30 pattern:$0x76325410] %v459_v16  ;;  %v524_v26 = vld [vmem:[#allocation2 + $0x8] sm:$0xff]  ;;  %1072 = vmatprep.subr.msk.bf16.mxu1 %vm599_vm0, %v1065_v28  ;;  %v607_v37 = vsel %vm599_vm0, %v1064_v29, 0 }
  0x86   : > { %1053 = vst.sshfl [vmem:[#allocation2 + $0x58] sm:$0xf pattern:$0x76325410] %v503_v13  ;;  %v533_v32 = vld [vmem:[#allocation2 + $0x50] sm:$0x33]  ;;  %678 = vmatpush1.bf16.msra.mxu1 %v607_v37 }
  0x87   : > { %1038 = vst.sshfl [vmem:[#allocation2 + $0x10] sm:$0xf0 pattern:$0x76325410] %v348_v14  ;;  %v1067_v38 = vcombine.high %v533_v32, %v533_v32  ;;  %v1066_v39 = vcombine.low %v533_v32, %v533_v32  ;;  %s1287_s5 = sshll.u32 %s1385_s12, 4  ;;  %s1288_s5 = int_to_ptr.vmem [resolvable:$false] %s1287_s5 }
  0x88   : > { %1047 = vst.sshfl [vmem:[#allocation2 + $0x30] sm:$0x30 pattern:$0x76325410] %v1197_v17  ;;  %s1289_s27 = scalar_lea.vmem %s1288_s5, 1024  ;;  %p1290_p10 = scmp.lt.s32.totalorder %s886_s6, %s1288_s5 }
  0x89   : > { %1048 = vst.sshfl [vmem:[#allocation2 + $0x34] sm:$0xf0 pattern:$0x76325410] %v461_v18  ;;  %v527_v30 = vld [vmem:[#allocation2 + $0x20] sm:$0xff]  ;;  %v613_v48 = vsel %vm599_vm0, %v1066_v39, 0  ;;  %p1291_p1 = scmp.lt.s32.totalorder %s1289_s27, %s1283_s20 }
  0x8a   : > { %v1044_v20 = vld.sshfl [vmem:[%s1605_s10] sm:$0x33 pattern:$0x76325410]  ;;  %v1055_v33 = vcombine.high %v523_v25, %v527_v30  ;;  %v1054_v34 = vcombine.low %v523_v25, %v527_v30 }
  0x8b   : > { %1040 = vst.sshfl [vmem:[#allocation2 + $0x1c] sm:$0x30 pattern:$0x76325410] %v1199_v19  ;;  %425 = vst [vmem:[#allocation2 + $0x38] sm:$0x33] %v1044_v20  ;;  %p1292_p8 = por %p1291_p1, %p1290_p10 }
  0x8c   : > { %v528_v31 = vld [vmem:[#allocation2 + $0x28] sm:$0xff]  ;;  %638 = vmatprep.subr.bf16.mxu0 %v1055_v33 }
  0x8d   : > { %v1057_v35 = vcombine.high %v524_v26, %v528_v31  ;;  %v534_v36 = vld [vmem:[#allocation2 + $0x58] sm:$0x33]  ;;  %v1056_v40 = vcombine.low %v524_v26, %v528_v31  ;;  %639 = vmatpush1.bf16.msra.mxu0 %v1054_v34  ;;  %p1293_p13 = pnand %p1292_p8, %p1286_p6 }
  0x8e   : > { %v525_v41 = vld [vmem:[#allocation2 + $0x10] sm:$0xff]  ;;  %v1069_v43 = vcombine.high %v534_v36, %v534_v36  ;;  %v1068_v44 = vcombine.low %v534_v36, %v534_v36  ;;  %1074 = vmatprep.subr.msk.bf16.mxu0 %vm599_vm0, %v1067_v38 }
  0x8f   : > { %679 = vmatprep.subr.bf16.mxu1 %v1057_v35 }
  0x90   : > { %v529_v42 = vld [vmem:[#allocation2 + $0x30] sm:$0xff]  ;;  %680 = vmatpush1.bf16.msra.mxu1 %v1056_v40  ;;  %1071 = vmatmul.mubr.msk.bf16.vlgmr.msra.gmra.mxu0 %vm595_vm1, %v522_v45  ;;  %v619_v50 = vsel %vm599_vm0, %v1068_v44, 0 }
  0x91   : > { %v1059_v49 = vcombine.high %v525_v41, %v529_v42  ;;  %1076 = vmatprep.subr.msk.bf16.mxu1 %vm599_vm0, %v1069_v43  ;;  %719 = vmatpush1.bf16.msra.mxu0 %v613_v48  ;;  %v1058_v52 = vcombine.low %v525_v41, %v529_v42 }
  0x92   : > { %v526_v46 = vld [vmem:[#allocation2 + $0x18] sm:$0xff]  ;;  %738 = vmatprep.mubr.bf16.mxu0 %v1384_v0 }
  0x93   : > { %v530_v47 = vld [vmem:[#allocation2 + $0x38] sm:$0xff]  ;;  %1073 = vmatmul.mubr.msk.bf16.vlgmr.msra.gmra.mxu1 %vm595_vm1, %v522_v45  ;;  %720 = vmatprep.subr.bf16.mxu0 %v1059_v49 }
  0x94   : > { %v1061_v51 = vcombine.high %v526_v46, %v530_v47  ;;  %760 = vmatpush1.bf16.msra.mxu1 %v619_v50  ;;  %v1060_v53 = vcombine.low %v526_v46, %v530_v47  ;;  %779 = vmatprep.mubr.bf16.mxu1 %v1384_v0 }
  0x95   : > { %721 = vmatpush1.bf16.msra.mxu0 %v1058_v52 }
  0x96   : > { %761 = vmatprep.subr.bf16.mxu1 %v1061_v51 }
  0x98   : > { %762 = vmatpush1.bf16.msra.mxu1 %v1060_v53  ;;  %1075 = vmatmul.mubr.msk.bf16.vlgmr.msra.gmra.mxu0 %vm595_vm1, %v522_v45 }
  0x9b   : > { %1077 = vmatmul.mubr.msk.bf16.vlgmr.msra.gmra.mxu1 %vm595_vm1, %v522_v45 }
 0x150   : > { %v658_v54 = vpop.f32.mrf.mxu0 }
 0x152   : > { %v660_v55 = vpop.f32.mrf.mxu0 }
 0x153   : > { %v699_v56 = vpop.f32.mrf.mxu1  ;;  %v1092_v57 = vpack.c.bf16 %v660_v55, %v658_v54 }
 0x154   : > { %v662_v58 = vpop.f32.mrf.mxu0 }
 0x155   : > { %v701_v59 = vpop.f32.mrf.mxu1  ;;  %820 = vst [vmem:[%s1644_s25] sm:$0xff] %v1092_v57  ;;  %v828_v61 = vunpack.c.l.bf16 %v1092_v57  ;;  %v829_v62 = vunpack.c.h.bf16 %v1092_v57 }
 0x156   : > { %v1093_v60 = vpack.c.bf16 %v701_v59, %v699_v56  ;;  %v663_v63 = vpop.f32.mrf.mxu0 }
 0x157   : > { %v703_v0 = vpop.f32.mrf.mxu1  ;;  %v836_v2 = vadd.f32 %v829_v62, %v828_v61  ;;  %v847_v3 = vmul.f32 %v828_v61, %v828_v61  ;;  %v848_v7 = vmul.f32 %v829_v62, %v829_v62 }
 0x158   : > { %821 = vst [vmem:[%s1644_s25 + $0x8] sm:$0xff] %v1093_v60  ;;  %v830_v1 = vunpack.c.l.bf16 %v1093_v60  ;;  %v740_v5 = vpop.f32.mrf.mxu0  ;;  %v831_v6 = vunpack.c.h.bf16 %v1093_v60 }
 0x159   : > { %v704_v4 = vpop.f32.mrf.mxu1  ;;  %v855_v12 = vadd.f32 %v848_v7, %v847_v3 }
 0x15a   : > { %v837_v8 = vadd.f32 %v836_v2, %v830_v1  ;;  %v849_v9 = vmul.f32 %v830_v1, %v830_v1  ;;  %v742_v10 = vpop.f32.mrf.mxu0  ;;  %v850_v16 = vmul.f32 %v831_v6, %v831_v6 }
 0x15b   : > { %v781_v11 = vpop.f32.mrf.mxu1  ;;  %v1094_v13 = vpack.c.bf16 %v742_v10, %v740_v5 }
 0x15c   : > { %v744_v14 = vpop.f32.mrf.mxu0  ;;  %v856_v17 = vadd.f32 %v855_v12, %v849_v9  ;;  %v838_v21 = vadd.f32 %v837_v8, %v831_v6 }
 0x15d   : > { %v783_v15 = vpop.f32.mrf.mxu1  ;;  %822 = vst [vmem:[%s1644_s25 + $0x10] sm:$0xff] %v1094_v13  ;;  %v832_v19 = vunpack.c.l.bf16 %v1094_v13  ;;  %v833_v20 = vunpack.c.h.bf16 %v1094_v13 }
 0x15e   : > { %v1095_v18 = vpack.c.bf16 %v783_v15, %v781_v11  ;;  %v745_v22 = vpop.f32.mrf.mxu0  ;;  %v857_v27 = vadd.f32 %v856_v17, %v850_v16 }
 0x15f   : > { %v785_v23 = vpop.f32.mrf.mxu1  ;;  %v839_v25 = vadd.f32 %v838_v21, %v832_v19  ;;  %v851_v26 = vmul.f32 %v832_v19, %v832_v19  ;;  %v852_v30 = vmul.f32 %v833_v20, %v833_v20 }
 0x160   : > { %823 = vst [vmem:[%s1644_s25 + $0x18] sm:$0xff] %v1095_v18  ;;  %v834_v24 = vunpack.c.l.bf16 %v1095_v18  ;;  %v835_v32 = vunpack.c.h.bf16 %v1095_v18 }
 0x161   : > { %v786_v28 = vpop.f32.mrf.mxu1  ;;  %v840_v29 = vadd.f32 %v839_v25, %v833_v20  ;;  %v858_v31 = vadd.f32 %v857_v27, %v851_v26 }
 0x162   : > { %v853_v34 = vmul.f32 %v834_v24, %v834_v24  ;;  %v854_v38 = vmul.f32 %v835_v32, %v835_v32 }
 0x163   : > { %v841_v33 = vadd.f32 %v840_v29, %v834_v24  ;;  %v859_v35 = vadd.f32 %v858_v31, %v852_v30 }
 0x165   : > { %v842_v36 = vadd.f32 %v841_v33, %v835_v32  ;;  %v860_v37 = vadd.f32 %v859_v35, %v853_v34 }
 0x167   : > { %843 = vadd.xlane.f32.xlu0 %v842_v36  ;;  %v861_v39 = vadd.f32 %v860_v37, %v854_v38 }
 0x16b   : > { %862 = vadd.xlane.f32.xlu0 %v861_v39 }
 0x16c   : > { %1296 = shalt.err (!%p1293_p13)
}
 0x16d   : > { %s1297_s9 = scalar_lea.hbm %s883_s8, 512  ;;  %s1301_s28 = scalar_lea.hbm %s1703_s3, 1024 }
 0x16e   : > { %p1298_p9 = scmp.ne.s32.totalorder %s883_s8, %s1297_s9  ;;  %p1302_p11 = scmp.lt.s32.totalorder %s883_s8, %s1703_s3 }
 0x16f   : > { %p1303_p3 = scmp.lt.s32.totalorder %s1301_s28, %s1297_s9 }
 0x170   : > { %p1299_p12 = pnand %p1298_p9, %p1734_p7 }
 0x171   : > { %p1304_p5 = por %p1303_p3, %p1302_p11 }
 0x172   : > { %p1300_p2 = pneg %p1299_p12 }
 0x174   : > { %p1305_p0 = pnand %p1304_p5, %p1300_p2 }
 0x176   : > { %1308 = shalt.err (!%p1305_p0)
}
 0x177   : > { %1107 = dma.vmem_to_hbm [thread:$0]  (%p1734_p7), %s886_s6, 512, %s883_s8, %s867_s7   ;;  %vm845_vm2 = vcmask 7168   ;;  %vm864_vm3 = vcmask 15368  }
 0x178   : > { %p282_p4 = scmp.lt.s32.totalorder %s1445_s22, 1 }
 0x17a   : > { %s1746_s22 = smov (!%p282_p4, %s1445_s22), 1 }
 0x17b   : > { %s1031_s25 = sshll.u32 %s1746_s22, 3 }
 0x17c   : > { %s285_s11 = scalar_lea.vmem %s1704_s4, %s1031_s25 }
 0x1f0   : > { %v844_v40 = vpop.xlane.xlu0 %843 }
 0x1f1   : > { %846 = vst.msk [vmem:[%s285_s11] sm:$0xff] %vm845_vm2, %v844_v40 }
 0x1f4   : > { %v863_v41 = vpop.xlane.xlu0 %862 }
 0x1f5   : > { %865 = vst.msk [vmem:[%s285_s11] sm:$0xff] %vm864_vm3, %v863_v41 }
 0x1f6 PF: > { %s900_s13 = sand.u32 1, %s1367_s18   ;;  %p1735_p6 = scmp.ne.s32.totalorder %s1717_s26, 0 }
 0x1f7   : > { %p1736_p7 = scmp.ge.s32.totalorder %s1379_s21, 2  ;;  %s901_s22 = scalar_lea.sflag [#allocation5], %s900_s13 }
 0x1f9   : > { %p1121_p10 = pnand %p1736_p7, %p1735_p6 }
 0x1fb   : > { %p1122_p1 = pneg %p1121_p10 }
 0x1fd   : > { %1350 = dma.done.wait (%p1122_p1), %s901_s22, 512  }
 0x1fe   : > { %1352 = vsyncadd (%p1122_p1), %s901_s22, 4294966784  ;;  %s1737_s6 = sld [smem:[#allocation14_spill]]  ;;  %p21_p8 = scmp.ge.s32.totalorder %s1479_s30, 4  }
 0x1ff   : > { %s1738_s20 = sld [smem:[#allocation15_spill]]  ;;  %s1739_s15 = smov %s1359_s16 }
 0x200   : > { %s1740_s16 = smov %s1363_s17  ;;  %s1741_s17 = smov %s1565_s23 }
 0x201   : > { %s1742_s18 = smov %s1371_s19  ;;  %s1744_s21 = smov %s1479_s30 }
 0x202   :  { %23 = sbr.rel (!%p21_p8) target bundleno = 11 (0xb), region = 106 }
 0x204   : > { %s1743_s19 = smov %s1737_s6 }
 0x207   :  { %913 = vsyncpa [#allocation4], 1 }
 0x208   :  { %915 = vsyncpa [#allocation4 + $0x1], 1 }
 0x209   :  { %916 = vsyncpa [#allocation7], 1 }
 0x20a   :  { %918 = vsyncpa [#allocation7 + $0x1], 1 }
 0x20b   :  { %919 = vsyncpa [#allocation5], 1 }
 0x20c   :  { %921 = vsyncpa [#allocation5 + $0x1], 1 }

</bundles_post_ra>
